<compile_context>
chip_gen: v6e
topology: v6e:2x2x1
jax: 0.10.0
libtpu: 0.0.40
codegen_flags: <defaults>
</compile_context>

<pallas_src>
import functools

import jax
import jax.numpy as jnp
from jax.experimental import pallas as pl
from jax.experimental.pallas import tpu as pltpu


def _column_butterfly(w, dtype):
    """Constant (W, 2*Wh) matrix.

    For a length-W row r with interleaved even/odd columns:
      r @ M = [ (r_even + r_odd) / 2  |  (r_odd - r_even) / 2 ]   per column pair.
    """
    wh = w // 2
    cols = jnp.arange(w)
    out_col = cols // 2
    onehot = (out_col[:, None] == jnp.arange(wh)[None, :]).astype(dtype)
    half = jnp.asarray(0.5, dtype)
    sum_part = onehot * half                                # +0.5 for every col
    sign = jnp.where((cols % 2) == 1, half, -half)          # +0.5 odd, -0.5 even
    diff_part = onehot * sign[:, None]
    return jnp.concatenate([sum_part, diff_part], axis=1)   # (W, 2*Wh)


def _dwt_kernel(x_ref, m_ref, o_ref, *, w, wh, tc, thh):
    # x_ref: (TC, THh, 2*W)   lanes [0:W] = even input row, [W:2W] = odd row
    # m_ref: (W, 2*Wh)        column butterfly with the 0.5 scale folded in
    # o_ref: (4, TC, THh, Wh) subbands [LL, HL, LH, HH]
    xv = x_ref[...].reshape(tc * thh, 2 * w)
    a = xv[:, :w]            # even input rows
    b = xv[:, w:]            # odd input rows

    e = jnp.dot(a, m_ref[...], preferred_element_type=jnp.float32,
                precision=jax.lax.Precision.HIGHEST)        # [sa/2 | da/2]
    o = jnp.dot(b, m_ref[...], preferred_element_type=jnp.float32,
                precision=jax.lax.Precision.HIGHEST)        # [sb/2 | db/2]

    s = e + o                # [LL | HL]
    d = o - e                # [LH | HH]

    dt = o_ref.dtype
    o_ref[0] = s[:, :wh].reshape(tc, thh, wh).astype(dt)    # LL
    o_ref[1] = s[:, wh:].reshape(tc, thh, wh).astype(dt)    # HL
    o_ref[2] = d[:, :wh].reshape(tc, thh, wh).astype(dt)    # LH
    o_ref[3] = d[:, wh:].reshape(tc, thh, wh).astype(dt)    # HH


def _largest_divisor(n, cap, multiple_of=1):
    best = None
    for d in range(1, n + 1):
        if n % d == 0 and d <= cap and d % multiple_of == 0:
            best = d
    return best


def dwt_pallas(x, *, target_block_bytes=2 * 1024 * 1024):
    N, C, H, W = x.shape
    assert H % 2 == 0 and W % 2 == 0, "DWT needs even spatial dims"
    Hh, Wh = H // 2, W // 2
    itemsize = x.dtype.itemsize

    # Free reshape: merge each (even, odd) input-row pair into one 2W-long row.
    xr = x.reshape(N, C, Hh, 2 * W)

    # Constant column-parity butterfly, applied on the MXU inside the kernel.
    m = _column_butterfly(W, x.dtype)

    # --- tile choice: a few MiB per step, THh a multiple of 8 sublanes ------
    row_bytes = 2 * W * itemsize
    max_rows = max(1, target_block_bytes // row_bytes)
    thh = _largest_divisor(Hh, max_rows, multiple_of=8)
    if thh is None:                       # tiny Hh: fall back to any divisor
        thh = _largest_divisor(Hh, max_rows) or Hh
    max_c = max(1, target_block_bytes // (thh * row_bytes))
    tc = _largest_divisor(C, max_c) or 1

    grid = (N, C // tc, Hh // thh)

    # Explicit VMEM budget (double-buffered in/out blocks + M + slack).
    in_block_bytes = tc * thh * 2 * W * itemsize
    out_block_bytes = 4 * tc * thh * Wh * itemsize
    m_bytes = W * 2 * Wh * m.dtype.itemsize
    vmem_est = 2 * (in_block_bytes + out_block_bytes + m_bytes) + (2 << 20)
    vmem_limit = int(min(max(2 * vmem_est, 16 * 2**20), 64 * 2**20))

    kernel = functools.partial(_dwt_kernel, w=W, wh=Wh, tc=tc, thh=thh)

    out = pl.pallas_call(
        kernel,
        out_shape=jax.ShapeDtypeStruct((N, 4, C, Hh, Wh), x.dtype),
        grid_spec=pltpu.PrefetchScalarGridSpec(
            num_scalar_prefetch=0,
            grid=grid,
            in_specs=[
                pl.BlockSpec((None, tc, thh, 2 * W),
                             lambda n, ci, hi: (n, ci, hi, 0)),
                pl.BlockSpec((W, 2 * Wh),
                             lambda n, ci, hi: (0, 0)),
            ],
            out_specs=pl.BlockSpec((None, 4, tc, thh, Wh),
                                   lambda n, ci, hi: (n, 0, ci, hi, 0)),
        ),
        compiler_params=pltpu.CompilerParams(
            dimension_semantics=("parallel", "parallel", "parallel"),
            vmem_limit_bytes=vmem_limit,
        ),
    )(xr, m)

    # Free reshape: (N, 4, C, Hh, Wh) -> (N, 4*C, Hh, Wh); channel order is
    # [LL_0..LL_{C-1}, HL_.., LH_.., HH_..] == torch.cat((LL,HL,LH,HH), dim=1).
    return out.reshape(N, 4 * C, Hh, Wh)


def dwt_ref(x):
    # Pure-JAX reference reproducing dwt_init exactly.
    x01 = x[:, :, 0::2, :] / 2
    x02 = x[:, :, 1::2, :] / 2
    x1 = x01[:, :, :, 0::2]
    x2 = x02[:, :, :, 0::2]
    x3 = x01[:, :, :, 1::2]
    x4 = x02[:, :, :, 1::2]
    return jnp.concatenate(
        (x1 + x2 + x3 + x4,
         -x1 - x2 + x3 + x4,
         -x1 + x2 - x3 + x4,
         x1 - x2 - x3 + x4), axis=1)


if __name__ == "__main__":
    key = jax.random.PRNGKey(0)
    x = jax.random.normal(key, (2, 4, 16, 16), dtype=jnp.float32)

    out = jax.block_until_ready(dwt_pallas(x))
    ref = dwt_ref(x)

    assert out.shape == (2, 16, 8, 8), out.shape
    assert jnp.allclose(out, ref, atol=1e-5, rtol=1e-5), (
        "max abs err", float(jnp.max(jnp.abs(out - ref))))

    print("KERNEL_OK")
</pallas_src>

<mosaic_0001>
module attributes {stable_mosaic.version = 11 : i64} {
  func.func @_dwt_kernel(%arg0: i32, %arg1: i32, %arg2: i32, %arg3: memref<1x4x8x32xf32, #tpu.memory_space<vmem>>, %arg4: memref<16x16xf32, #tpu.memory_space<vmem>>, %arg5: memref<1x4x4x8x8xf32, #tpu.memory_space<vmem>>) attributes {dimension_semantics = [#tpu.dimension_semantics<parallel>, #tpu.dimension_semantics<parallel>, #tpu.dimension_semantics<parallel>], iteration_bounds = array<i64: 2, 1, 1>, scalar_prefetch = 0 : i64, scratch_operands = 0 : i64, tpu.core_type = #tpu.core_type<tc>, window_params = [{transform_indices = @transform_0, window_bounds = array<i64: 1, 4, 8, 32>}, {pipeline_mode = #tpu.pipeline_mode<synchronous>, transform_indices = @transform_1, window_bounds = array<i64: 16, 16>}, {transform_indices = @transform_2, window_bounds = array<i64: 1, 4, 4, 8, 8>}]} {
    %c0 = arith.constant 0 : index
    %c0_0 = arith.constant 0 : index
    %c0_1 = arith.constant 0 : index
    %c0_2 = arith.constant 0 : index
    %0 = vector.load %arg3[%c0, %c0_0, %c0_1, %c0_2] : memref<1x4x8x32xf32, #tpu.memory_space<vmem>>, vector<1x4x8x32xf32>
    %1 = vector.shape_cast %0 : vector<1x4x8x32xf32> to vector<4x8x32xf32>
    %2 = vector.shape_cast %1 : vector<4x8x32xf32> to vector<32x32xf32>
    %3 = vector.extract_strided_slice %2 {offsets = [0, 0], sizes = [32, 16], strides = [1, 1]} : vector<32x32xf32> to vector<32x16xf32>
    %4 = vector.extract_strided_slice %2 {offsets = [0, 16], sizes = [32, 16], strides = [1, 1]} : vector<32x32xf32> to vector<32x16xf32>
    %c0_3 = arith.constant 0 : index
    %c0_4 = arith.constant 0 : index
    %5 = vector.load %arg4[%c0_3, %c0_4] : memref<16x16xf32, #tpu.memory_space<vmem>>, vector<16x16xf32>
    %cst = arith.constant dense<0.000000e+00> : vector<32x16xf32>
    %6 = tpu.matmul %3, %5, %cst {dimension_numbers = #tpu.dot_dimension_numbers<[1], [0], [0], [1], [0, 0, 1, 1], [], []>, precision = #tpu.contract_precision<fp32>} : vector<32x16xf32>, vector<16x16xf32>, vector<32x16xf32> -> vector<32x16xf32>
    %c0_5 = arith.constant 0 : index
    %c0_6 = arith.constant 0 : index
    %7 = vector.load %arg4[%c0_5, %c0_6] : memref<16x16xf32, #tpu.memory_space<vmem>>, vector<16x16xf32>
    %cst_7 = arith.constant dense<0.000000e+00> : vector<32x16xf32>
    %8 = tpu.matmul %4, %7, %cst_7 {dimension_numbers = #tpu.dot_dimension_numbers<[1], [0], [0], [1], [0, 0, 1, 1], [], []>, precision = #tpu.contract_precision<fp32>} : vector<32x16xf32>, vector<16x16xf32>, vector<32x16xf32> -> vector<32x16xf32>
    %9 = arith.addf %6, %8 : vector<32x16xf32>
    %10 = arith.subf %8, %6 : vector<32x16xf32>
    %11 = vector.extract_strided_slice %9 {offsets = [0, 0], sizes = [32, 8], strides = [1, 1]} : vector<32x16xf32> to vector<32x8xf32>
    %12 = vector.shape_cast %11 : vector<32x8xf32> to vector<4x8x8xf32>
    %c0_8 = arith.constant 0 : index
    %c0_9 = arith.constant 0 : index
    %c0_10 = arith.constant 0 : index
    %c0_11 = arith.constant 0 : index
    %c0_12 = arith.constant 0 : index
    %13 = vector.load %arg5[%c0_8, %c0_9, %c0_10, %c0_11, %c0_12] : memref<1x4x4x8x8xf32, #tpu.memory_space<vmem>>, vector<1x1x4x8x8xf32>
    %14 = vector.shape_cast %13 : vector<1x1x4x8x8xf32> to vector<4x8x8xf32>
    %15 = vector.shape_cast %12 : vector<4x8x8xf32> to vector<1x1x4x8x8xf32>
    tpu.vector_store %arg5[%c0_8, %c0_9, %c0_10, %c0_11, %c0_12], %15 {strides = array<i32>} : memref<1x4x4x8x8xf32, #tpu.memory_space<vmem>>, vector<1x1x4x8x8xf32>,
    %16 = vector.extract_strided_slice %9 {offsets = [0, 8], sizes = [32, 8], strides = [1, 1]} : vector<32x16xf32> to vector<32x8xf32>
    %17 = vector.shape_cast %16 : vector<32x8xf32> to vector<4x8x8xf32>
    %c0_13 = arith.constant 0 : index
    %c1 = arith.constant 1 : index
    %c0_14 = arith.constant 0 : index
    %c0_15 = arith.constant 0 : index
    %c0_16 = arith.constant 0 : index
    %18 = vector.load %arg5[%c0_13, %c1, %c0_14, %c0_15, %c0_16] : memref<1x4x4x8x8xf32, #tpu.memory_space<vmem>>, vector<1x1x4x8x8xf32>
    %19 = vector.shape_cast %18 : vector<1x1x4x8x8xf32> to vector<4x8x8xf32>
    %20 = vector.shape_cast %17 : vector<4x8x8xf32> to vector<1x1x4x8x8xf32>
    tpu.vector_store %arg5[%c0_13, %c1, %c0_14, %c0_15, %c0_16], %20 {strides = array<i32>} : memref<1x4x4x8x8xf32, #tpu.memory_space<vmem>>, vector<1x1x4x8x8xf32>,
    %21 = vector.extract_strided_slice %10 {offsets = [0, 0], sizes = [32, 8], strides = [1, 1]} : vector<32x16xf32> to vector<32x8xf32>
    %22 = vector.shape_cast %21 : vector<32x8xf32> to vector<4x8x8xf32>
    %c0_17 = arith.constant 0 : index
    %c2 = arith.constant 2 : index
    %c0_18 = arith.constant 0 : index
    %c0_19 = arith.constant 0 : index
    %c0_20 = arith.constant 0 : index
    %23 = vector.load %arg5[%c0_17, %c2, %c0_18, %c0_19, %c0_20] : memref<1x4x4x8x8xf32, #tpu.memory_space<vmem>>, vector<1x1x4x8x8xf32>
    %24 = vector.shape_cast %23 : vector<1x1x4x8x8xf32> to vector<4x8x8xf32>
    %25 = vector.shape_cast %22 : vector<4x8x8xf32> to vector<1x1x4x8x8xf32>
    tpu.vector_store %arg5[%c0_17, %c2, %c0_18, %c0_19, %c0_20], %25 {strides = array<i32>} : memref<1x4x4x8x8xf32, #tpu.memory_space<vmem>>, vector<1x1x4x8x8xf32>,
    %26 = vector.extract_strided_slice %10 {offsets = [0, 8], sizes = [32, 8], strides = [1, 1]} : vector<32x16xf32> to vector<32x8xf32>
    %27 = vector.shape_cast %26 : vector<32x8xf32> to vector<4x8x8xf32>
    %c0_21 = arith.constant 0 : index
    %c3 = arith.constant 3 : index
    %c0_22 = arith.constant 0 : index
    %c0_23 = arith.constant 0 : index
    %c0_24 = arith.constant 0 : index
    %28 = vector.load %arg5[%c0_21, %c3, %c0_22, %c0_23, %c0_24] : memref<1x4x4x8x8xf32, #tpu.memory_space<vmem>>, vector<1x1x4x8x8xf32>
    %29 = vector.shape_cast %28 : vector<1x1x4x8x8xf32> to vector<4x8x8xf32>
    %30 = vector.shape_cast %27 : vector<4x8x8xf32> to vector<1x1x4x8x8xf32>
    tpu.vector_store %arg5[%c0_21, %c3, %c0_22, %c0_23, %c0_24], %30 {strides = array<i32>} : memref<1x4x4x8x8xf32, #tpu.memory_space<vmem>>, vector<1x1x4x8x8xf32>,
    return
  }
  func.func @transform_0(%arg0: i32, %arg1: i32, %arg2: i32) -> (i32, i32, i32, i32) {
    %c0_i32 = arith.constant 0 : i32
    %c0_i32_0 = arith.constant 0 : i32
    return %arg0, %arg1, %arg2, %c0_i32 : i32, i32, i32, i32
  }
  func.func @transform_1(%arg0: i32, %arg1: i32, %arg2: i32) -> (i32, i32) {
    %c0_i32 = arith.constant 0 : i32
    %c0_i32_0 = arith.constant 0 : i32
    %c0_i32_1 = arith.constant 0 : i32
    return %c0_i32, %c0_i32_0 : i32, i32
  }
  func.func @transform_2(%arg0: i32, %arg1: i32, %arg2: i32) -> (i32, i32, i32, i32, i32) {
    %c0_i32 = arith.constant 0 : i32
    %c0_i32_0 = arith.constant 0 : i32
    %c0_i32_1 = arith.constant 0 : i32
    return %arg0, %c0_i32, %arg1, %arg2, %c0_i32_0 : i32, i32, i32, i32, i32
  }
}

</mosaic_0001>

<bundles_post_ra>
// kernel: tpu_custom_call.1
= control target key start
LH: loop header
LB: loop body
LE: loop exit
PB: predicated region body
PF: predicated region fallthrough
CT: control target
= control target key end

     0   :  { %7 = vsyncpa [#allocation3], 0  ;;  %s2391_s0 = inlined_call_operand.hbm [shape: f32[2,4,8,32], index: 0, kind: input, shape index: {}]   ;;  %s2392_s1 = inlined_call_operand.hbm [shape: f32[16,16], index: 1, kind: input, shape index: {}]   ;;  %s2393_s2 = inlined_call_operand.hbm [shape: f32[2,4,4,8,8], index: 2, kind: output, shape index: {}]  }
   0x1   :  { %9 = vsyncpa [#allocation3 + $0x1], 0 }
   0x2   :  { %10 = vsyncpa [#allocation6], 0 }
   0x3   :  { %11 = vsyncpa [#allocation4], 0 }
   0x4   :  { %13 = vsyncpa [#allocation4 + $0x1], 0  ;;  %s2065_s9 = smov 0   ;;  %s2067_s10 = smov 0  }
   0x5   :  { %s2069_s11 = smov 0   ;;  %s2071_s12 = smov 0  }
   0x6   :  { %s2073_s13 = smov 0   ;;  %s2075_s14 = smov 0  }
   0x7 LB: > { %s1599_s15 = sadd.s32 4294967295, %s2039_s14   ;;  %s1600_s16 = sadd.s32 4294967294, %s2039_s14   ;;  %s2039_s14 = sphi %s2075_s14, %s19_s14   ;;  %s2035_s13 = sphi %s2073_s13, %s2413_s13   ;;  %s2031_s12 = sphi %s2071_s12, %s2412_s12   ;;  %s2027_s11 = sphi %s2069_s11, %s2411_s11   ;;  %s2023_s10 = sphi %s2067_s10, %s2410_s10   ;;  %s2019_s9 = sphi %s2065_s9, %s2409_s9  }
   0x8   : > { %p62_p0 = scmp.ne.s32.totalorder %s2023_s10, %s2019_s9  ;;  %p2099_p1 = scmp.eq.s32.totalorder %s1599_s15, 0 }
   0x9   : > { %p2103_p2 = scmp.eq.s32.totalorder %s1599_s15, 1  ;;  %p117_p3 = scmp.eq.s32.totalorder %s1600_s16, 1 }
   0xa   : > { %p2109_p4 = por %p2099_p1, %p62_p0  ;;  %p1601_p5 = scmp.ge.s32.totalorder %s2039_s14, 1 }
   0xb   : > { %p2114_p6 = por %p117_p3, %p62_p0  ;;  %p124_p7 = scmp.lt.s32.totalorder %s2039_s14, 3 }
   0xc   : > { %s2398_s19 = scalar_select %p2109_p4, 1, 0 }
   0xd   : > { %s2399_s20 = scalar_select %p2114_p6, 1, 0 }
   0xe   : > { %p2119_p8 = pnand %p1601_p5, %p124_p7  ;;  %s2041_s22 = smov [#allocation5]  }
   0xf   : > { %s136_s23 = sshll.u32 %s2041_s22, 4  ;;  %s38_s25 = sadd.s32 1, %s2035_s13  ;;  %s137_s23 = int_to_ptr.vmem [resolvable:$true] %s136_s23 }
  0x10   : > { %p1830_p9 = pneg %p2119_p8  ;;  %s1912_s26 = scalar_lea.vmem %s137_s23, 256 }
  0x11   : > { %p1913_p13 = scmp.ne.s32.totalorder %s137_s23, %s1912_s26  ;;  %p1920_p5 = scmp.lt.s32.totalorder %s137_s23, %s137_s23 }
  0x12   : > { %p2128_p11 = pnand %p1830_p9, %p2099_p1  ;;  %p1921_p7 = scmp.lt.s32.totalorder %s1912_s26, %s1912_s26 }
  0x14   : > { %p1903_p12 = pneg %p2128_p11  ;;  %p1922_p6 = por %p1921_p7, %p1920_p5 }
  0x16   : > { %p1915_p0 = pnand %p1913_p13, %p1903_p12 }
  0x18   : > { %p1916_p3 = pneg %p1915_p0 }
  0x1a   : > { %p1923_p4 = pnand %p1922_p6, %p1916_p3 }
  0x1c   : > { %1926 = shalt.err (!%p1923_p4)
}
  0x1d   : > { %s2395_s27 = smov 128   ;;  %s2043_s28 = smov 8  }
  0x1e   : > { %1833 = dma.hbm_to_vmem [thread:$0]  (!%p2128_p11), %s2392_s1, 256, %s137_s23, [#allocation6], %s2395_s27, %s2395_s27, %s2043_s28  }
  0x1f   : > { %p40_p4 = scmp.ge.s32.totalorder %s38_s25, 2  ;;  %s49_s3 = sadd.s32 1, %s2027_s11 }
  0x20   : > { %p56_p6 = scmp.ne.s32.totalorder %s2027_s11, %s2023_s10  ;;  %p57_p9 = scmp.eq.s32.totalorder %s2039_s14, 0 }
  0x21   : > { %s2415_s25 = smov (%p40_p4, %s38_s25), 0  ;;  %p1843_p0 = scmp.lt.s32.totalorder %s2039_s14, 2 }
  0x22   : > { %p2149_p12 = por %p57_p9, %p56_p6  ;;  %p2155_p13 = por %p2103_p2, %p56_p6 }
  0x23   : > { %s42_s6 = ssub.s32 %s2035_s13, %s2415_s25  ;;  %s150_s7 = sand.u32 1, %s2027_s11  }
  0x24   : > { %p47_p11 = scmp.eq.s32.totalorder %s42_s6, 0  ;;  %s1604_s8 = sshll.u32 %s150_s7, 5 }
  0x25   : > { %s1628_s16 = sshll.u32 %s2035_s13, 9  ;;  %s154_s26 = scalar_lea.vmem [#allocation2], %s1604_s8 }
  0x26   : > { %s2164_s15 = scalar_select %p47_p11, %s2027_s11, %s49_s3  }
  0x27   : > { %s163_s24 = scalar_lea.hbm %s2391_s0, %s1628_s16  ;;  %s164_s29 = sshll.u32 %s154_s26, 4  ;;  %s165_s29 = int_to_ptr.vmem [resolvable:$true] %s164_s29 }
  0x28   : > { %p2172_p2 = pnand %p1843_p0, %p2149_p12  ;;  %s151_s30 = scalar_lea.sflag [#allocation3], %s150_s7 }
  0x29   : > { %s1940_s6 = scalar_lea.vmem %s165_s29, 512  ;;  %s2044_s3 = smov [#allocation2]  }
  0x2a   : > { %p1929_p3 = pneg %p2172_p2  ;;  %p1941_p5 = scmp.ne.s32.totalorder %s165_s29, %s1940_s6 }
  0x2b   : > { %s1945_s27 = sshll.u32 %s2044_s3, 4  ;;  %s1946_s27 = int_to_ptr.vmem [resolvable:$false] %s1945_s27 }
  0x2c   : > { %p1943_p7 = pnand %p1941_p5, %p1929_p3  ;;  %s1947_s16 = scalar_lea.vmem %s1946_s27, 1024 }
  0x2d   : > { %p1948_p6 = scmp.lt.s32.totalorder %s165_s29, %s1946_s27  ;;  %p1949_p9 = scmp.lt.s32.totalorder %s1947_s16, %s1940_s6 }
  0x2e   : > { %p1944_p4 = pneg %p1943_p7 }
  0x2f   : > { %p1950_p11 = por %p1949_p9, %p1948_p6 }
  0x31   : > { %p1951_p10 = pnand %p1950_p11, %p1944_p4 }
  0x33   : > { %1954 = shalt.err (!%p1951_p10)
}
  0x34   : > { %s2405_s4 = smov 128   ;;  %176 = sbr.rel (%p2119_p8) target bundleno = 549 (0x225), region = 28 }
  0x35   : > { %1837 = dma.hbm_to_vmem [thread:$0]  (!%p2172_p2), %s163_s24, 512, %s165_s29, %s151_s30, %s2405_s4, %s2405_s4, %s2043_s28  }
  0x36   : > { %s2186_s7 = sand.u32 (!%p2119_p8), 1, %s2023_s10   ;;  %p2406_p12 = scmp.ne.s32.totalorder (!%p2119_p8), %s2398_s19, 0 }
  0x37   : > { %s1608_s27 = sshll.u32 (!%p2119_p8), %s2186_s7, 5  ;;  %s179_s8 = scalar_lea.sflag (!%p2119_p8), [#allocation3], %s2186_s7 }
  0x38   : > { %s182_s22 = scalar_lea.vmem (!%p2119_p8), [#allocation2], %s1608_s27 }
  0x39   : > { %2006 = dma.done.wait (%p2406_p12), %s179_s8, 512  }
  0x3a   : > { %2008 = vsyncadd (%p2406_p12), %s179_s8, 4294966784 }
  0x3b   : > { %2010 = dma.done.wait (%p2099_p1), [#allocation6], 256  }
  0x3c   : > { %2012 = vsyncadd (%p2099_p1), [#allocation6], 4294967040  ;;  %vm215_vm0 = vcmask 130048   ;;  %v211_v0 = vld [vmem:[%s182_s22 + $0x10] sm:$0xff]  ;;  %v209_v1 = vld [vmem:[%s182_s22] sm:$0xff]  ;;  %s2045_s21 = smov 112  }
  0x3d   : > { %v212_v2 = vld [vmem:[%s182_s22 + $0x18] sm:$0xff]  ;;  %820 = vrot.lane.b32.xlu1 %v211_v0, %s2045_s21  ;;  %v223_v3 = vsel %vm215_vm0, %v211_v0, 0  ;;  %816 = vrot.lane.b32.xlu0 %v209_v1, %s2045_s21  ;;  %v217_v4 = vsel %vm215_vm0, %v209_v1, 0  ;;  %v210_v6 = vld [vmem:[%s182_s22 + $0x8] sm:$0xff]  ;;  %v213_v8 = vld [vmem:[#allocation5] sm:$0xff]  ;;  %s1610_s17 = sshll.u32 %s2186_s7, 7 }
  0x3e   : > { %v226_v5 = vsel %vm215_vm0, %v212_v2, 0  ;;  %v214_v7 = vld [vmem:[#allocation5 + $0x8] sm:$0xff]  ;;  %v2201_v9 = vand.u32 4294901760, %v223_v3  ;;  %v2203_v10 = vand.u32 4294901760, %v217_v4  ;;  %v220_v12 = vsel %vm215_vm0, %v210_v6, 0  ;;  %s2046_s19 = smov 120  }
  0x3f   : > { %v2205_v11 = vand.u32 4294901760, %v226_v5  ;;  %v2208_v13 = vand.u32 4294901760, %v220_v12  ;;  %v2210_v14 = vand.u32 4294901760, %v214_v7  ;;  %v2212_v15 = vand.u32 4294901760, %v213_v8  ;;  %s2301_s28 = scalar_lea.vmem [#allocation7], %s1610_s17  ;;  %s1629_s23 = sshll.u32 %s2031_s12, 11 }
  0x40   : > { %v316_v16 = vsub.f32 %v223_v3, %v2201_v9  ;;  %v296_v17 = vsub.f32 %v217_v4, %v2203_v10  ;;  %1716 = vmatprep.mubr.f32.mxu1 %v2203_v10  ;;  %vm1428_vm1 = vcmask 64512   ;;  %s1497_s24 = sshll.u32 %s2301_s28, 4  ;;  %s2337_s18 = scalar_lea.hbm %s2393_s2, %s1629_s23  ;;  %s2339_s24 = int_to_ptr.vmem [resolvable:$true] %s1497_s24 }
  0x41   : > { %v2217_v18 = vsub.f32 %v226_v5, %v2205_v11  ;;  %822 = vrot.lane.b32.xlu1 %v212_v2, %s2045_s21  ;;  %v306_v19 = vsub.f32 %v220_v12, %v2208_v13  ;;  %818 = vrot.lane.b32.xlu0 %v210_v6, %s2045_s21  ;;  %v2222_v20 = vsub.f32 %v214_v7, %v2210_v14  ;;  %s1481_s12 = scalar_lea.sflag [#allocation4], %s2186_s7  ;;  %s1955_s30 = scalar_lea.vmem %s2339_s24, 2048 }
  0x42   : > { %v2225_v21 = vsub.f32 %v213_v8, %v2212_v15  ;;  %1702 = vmatprep.subr.mxu0 %v2210_v14  ;;  %v297_v22 = vand.u32 4294901760, %v296_v17  ;;  %v317_v23 = vand.u32 4294901760, %v316_v16  ;;  %p1956_p1 = scmp.ne.s32.totalorder %s2339_s24, %s1955_s30  ;;  %s2047_s6 = smov [#allocation7]  }
  0x43   : > { %v327_v24 = vand.u32 4294901760, %v2217_v18  ;;  %1703 = vmatpush3.msra.mxu0 %v2210_v14  ;;  %v2231_v25 = vand.u32 4294901760, %v2222_v20  ;;  %v307_v26 = vand.u32 4294901760, %v306_v19  ;;  %s1959_s3 = sshll.u32 %s2047_s6, 4  ;;  %s1960_s3 = int_to_ptr.vmem [resolvable:$false] %s1959_s3 }
  0x44   : > { %v2234_v27 = vand.u32 4294901760, %v2225_v21  ;;  %1704 = vmatprep.subr.mxu0 %v2212_v15  ;;  %v298_v28 = vsub.f32 %v296_v17, %v297_v22  ;;  %v318_v29 = vsub.f32 %v316_v16, %v317_v23  ;;  %p1957_p8 = pnand %p1956_p1, %p2155_p13  ;;  %s1961_s16 = scalar_lea.vmem %s1960_s3, 4096 }
  0x45   : > { %v367_v30 = vsub.f32 %v2222_v20, %v2231_v25  ;;  %1705 = vmatpush3.msra.mxu0 %v2212_v15  ;;  %v308_v31 = vsub.f32 %v306_v19, %v307_v26  ;;  %v328_v33 = vsub.f32 %v2217_v18, %v327_v24  ;;  %p1962_p0 = scmp.lt.s32.totalorder %s2339_s24, %s1960_s3  ;;  %p1963_p2 = scmp.lt.s32.totalorder %s1961_s16, %s1955_s30 }
  0x46   : > { %v374_v32 = vsub.f32 %v2225_v21, %v2234_v27  ;;  %v299_v34 = vand.u32 4294901760, %v298_v28  ;;  %v319_v35 = vand.u32 4294901760, %v318_v29  ;;  %1722 = vmatprep.subr.mxu0 %v2222_v20  ;;  %p1958_p10 = pneg %p1957_p8 }
  0x47   : > { %v368_v36 = vand.u32 4294901760, %v367_v30  ;;  %v309_v37 = vand.u32 4294901760, %v308_v31  ;;  %v329_v39 = vand.u32 4294901760, %v328_v33  ;;  %p1964_p3 = por %p1963_p2, %p1962_p0 }
  0x48   : > { %v375_v38 = vand.u32 4294901760, %v374_v32  ;;  %1706 = vmatprep.mubr.f32.mxu0 %v299_v34 }
  0x49   : > { %1712 = vmatprep.subr.mxu1 %v368_v36  ;;  %1707 = vmatmul.mubr.f32.vlgmr.msra.gmra.mxu0 %v309_v37  ;;  %p1965_p5 = pnand %p1964_p3, %p1958_p10 }
  0x4a   : > { %1713 = vmatpush3.msra.mxu1 %v368_v36  ;;  %1709 = vmatprep.mubr.f32.mxu0 %v319_v35 }
  0x4b   : > { %1714 = vmatprep.subr.mxu1 %v375_v38  ;;  %1723 = vmatpush3.msra.mxu0 %v2222_v20 }
  0x4c   : > { %1715 = vmatpush3.msra.mxu1 %v375_v38  ;;  %1724 = vmatprep.subr.mxu0 %v2225_v21 }
  0x4d   : > { %1717 = vmatmul.mubr.f32.vlgmr.msra.gmra.mxu1 %v2208_v13  ;;  %1710 = vmatmul.mubr.f32.gmra.mxu0 %v329_v39 }
  0x4e   : > { %1719 = vmatprep.mubr.f32.mxu1 %v2201_v9  ;;  %1732 = vmatprep.subr.mxu1 %v2210_v14 }
  0x4f   : > { %1725 = vmatpush3.msra.mxu0 %v2225_v21  ;;  %1726 = vmatprep.mubr.f32.mxu0 %v296_v17 }
  0x50   : > { %1733 = vmatpush3.msra.mxu1 %v2210_v14  ;;  %1742 = vmatprep.subr.mxu0 %v2231_v25 }
  0x51   : > { %1720 = vmatmul.mubr.f32.gmra.mxu1 %v2205_v11  ;;  %1727 = vmatmul.mubr.f32.vlgmr.msra.gmra.mxu0 %v306_v19 }
  0x52   : > { %1734 = vmatprep.subr.mxu1 %v2212_v15  ;;  %1736 = vmatprep.mubr.f32.mxu1 %v297_v22 }
  0x53   : > { %1735 = vmatpush3.msra.mxu1 %v2212_v15  ;;  %1729 = vmatprep.mubr.f32.mxu0 %v316_v16 }
  0x54   : > { %1743 = vmatpush3.msra.mxu0 %v2231_v25  ;;  %1752 = vmatprep.subr.mxu1 %v2210_v14 }
  0x55   : > { %1737 = vmatmul.mubr.f32.vlgmr.msra.gmra.mxu1 %v307_v26  ;;  %1730 = vmatmul.mubr.f32.gmra.mxu0 %v2217_v18 }
  0x56   : > { %1739 = vmatprep.mubr.f32.mxu1 %v317_v23  ;;  %1744 = vmatprep.subr.mxu0 %v2234_v27 }
  0x57   : > { %1745 = vmatpush3.msra.mxu0 %v2234_v27  ;;  %1746 = vmatprep.mubr.f32.mxu0 %v2203_v10 }
  0x58   : > { %1753 = vmatpush3.msra.mxu1 %v2210_v14  ;;  %1762 = vmatprep.subr.mxu0 %v2210_v14 }
  0x59   : > { %1740 = vmatmul.mubr.f32.gmra.mxu1 %v327_v24  ;;  %1747 = vmatmul.mubr.f32.vlgmr.msra.gmra.mxu0 %v2208_v13 }
  0x5a   : > { %1754 = vmatprep.subr.mxu1 %v2212_v15  ;;  %1756 = vmatprep.mubr.f32.mxu1 %v2203_v10 }
  0x5b   : > { %1755 = vmatpush3.msra.mxu1 %v2212_v15  ;;  %1749 = vmatprep.mubr.f32.mxu0 %v2201_v9 }
  0x5c   : > { %1772 = vmatprep.subr.mxu1 %v368_v36  ;;  %1763 = vmatpush3.msra.mxu0 %v2210_v14 }
  0x5d   : > { %1757 = vmatmul.mubr.f32.vlgmr.msra.gmra.mxu1 %v2208_v13  ;;  %1750 = vmatmul.mubr.f32.gmra.mxu0 %v2205_v11 }
  0x5e   : > { %1759 = vmatprep.mubr.f32.mxu1 %v2201_v9  ;;  %1773 = vmatpush3.msra.mxu1 %v368_v36 }
  0x5f   : > { %1774 = vmatprep.subr.mxu1 %v375_v38  ;;  %1764 = vmatprep.subr.mxu0 %v2212_v15 }
  0x60   : > { %1775 = vmatpush3.msra.mxu1 %v375_v38  ;;  %1765 = vmatpush3.msra.mxu0 %v2212_v15 }
  0x61   : > { %1760 = vmatmul.mubr.f32.gmra.mxu1 %v2205_v11  ;;  %1792 = vmatprep.subr.mxu1 %v2210_v14 }
  0x62   : > { %1782 = vmatprep.subr.mxu0 %v2222_v20 }
  0xaf   : > { %v821_v40 = vpop.permute.xlu1 %820  ;;  %v817_v41 = vpop.permute.xlu0 %816 }
  0xb0   : > { %v828_v42 = vsel %vm215_vm0, %v821_v40, 0  ;;  %v824_v43 = vsel %vm215_vm0, %v817_v41, 0 }
  0xb1   : > { %v919_v44 = vand.u32 4294901760, %v828_v42  ;;  %v899_v45 = vand.u32 4294901760, %v824_v43 }
  0xb3   : > { %v920_v46 = vsub.f32 %v828_v42, %v919_v44  ;;  %v900_v47 = vsub.f32 %v824_v43, %v899_v45  ;;  %v823_v48 = vpop.permute.xlu1 %822  ;;  %v819_v49 = vpop.permute.xlu0 %818  ;;  %1776 = vmatprep.mubr.f32.mxu1 %v899_v45 }
  0xb4   : > { %v830_v50 = vsel %vm215_vm0, %v823_v48, 0  ;;  %v826_v51 = vsel %vm215_vm0, %v819_v49, 0 }
  0xb5   : > { %v901_v52 = vand.u32 4294901760, %v900_v47  ;;  %v929_v53 = vand.u32 4294901760, %v830_v50  ;;  %v909_v54 = vand.u32 4294901760, %v826_v51  ;;  %v921_v55 = vand.u32 4294901760, %v920_v46 }
  0xb7   : > { %v930_v56 = vsub.f32 %v830_v50, %v929_v53  ;;  %v910_v57 = vsub.f32 %v826_v51, %v909_v54  ;;  %1777 = vmatmul.mubr.f32.vlgmr.msra.gmra.mxu1 %v909_v54  ;;  %v902_v58 = vsub.f32 %v900_v47, %v901_v52  ;;  %v922_v62 = vsub.f32 %v920_v46, %v921_v55 }
  0xb8   : > { %1779 = vmatprep.mubr.f32.mxu1 %v919_v44  ;;  %1793 = vmatpush3.msra.mxu1 %v2210_v14 }
  0xb9   : > { %v931_v59 = vand.u32 4294901760, %v930_v56  ;;  %v911_v60 = vand.u32 4294901760, %v910_v57  ;;  %v903_v61 = vand.u32 4294901760, %v902_v58  ;;  %1794 = vmatprep.subr.mxu1 %v2212_v15  ;;  %v923_v2 = vand.u32 4294901760, %v922_v62 }
  0xba   : > { %1795 = vmatpush3.msra.mxu1 %v2212_v15 }
  0xbb   : > { %v912_v63 = vsub.f32 %v910_v57, %v911_v60  ;;  %1766 = vmatprep.mubr.f32.mxu0 %v903_v61  ;;  %1780 = vmatmul.mubr.f32.gmra.mxu1 %v929_v53  ;;  %v932_v1 = vsub.f32 %v930_v56, %v931_v59 }
  0xbc   : > { %1796 = vmatprep.mubr.f32.mxu1 %v901_v52  ;;  %1812 = vmatprep.subr.mxu1 %v2210_v14 }
  0xbd   : > { %v913_v0 = vand.u32 4294901760, %v912_v63  ;;  %v933_v3 = vand.u32 4294901760, %v932_v1 }
  0xbf   : > { %1767 = vmatmul.mubr.f32.vlgmr.msra.gmra.mxu0 %v913_v0  ;;  %1797 = vmatmul.mubr.f32.vlgmr.msra.gmra.mxu1 %v911_v60 }
  0xc0   : > { %1783 = vmatpush3.msra.mxu0 %v2222_v20  ;;  %1769 = vmatprep.mubr.f32.mxu0 %v923_v2 }
  0xc1   : > { %1799 = vmatprep.mubr.f32.mxu1 %v921_v55  ;;  %1784 = vmatprep.subr.mxu0 %v2225_v21 }
  0xc2   : > { %1785 = vmatpush3.msra.mxu0 %v2225_v21  ;;  %1813 = vmatpush3.msra.mxu1 %v2210_v14 }
  0xc3   : > { %1770 = vmatmul.mubr.f32.gmra.mxu0 %v933_v3  ;;  %1800 = vmatmul.mubr.f32.gmra.mxu1 %v931_v59 }
  0xc4   : > { %1786 = vmatprep.mubr.f32.mxu0 %v900_v47  ;;  %1816 = vmatprep.mubr.f32.mxu1 %v899_v45 }
  0xc5   : > { %1814 = vmatprep.subr.mxu1 %v2212_v15  ;;  %1802 = vmatprep.subr.mxu0 %v2231_v25 }
  0xc6   : > { %1815 = vmatpush3.msra.mxu1 %v2212_v15 }
  0xc7   : > { %1787 = vmatmul.mubr.f32.vlgmr.msra.gmra.mxu0 %v910_v57  ;;  %1817 = vmatmul.mubr.f32.vlgmr.msra.gmra.mxu1 %v909_v54 }
  0xc8   : > { %1803 = vmatpush3.msra.mxu0 %v2231_v25  ;;  %1789 = vmatprep.mubr.f32.mxu0 %v920_v46 }
  0xc9   : > { %1819 = vmatprep.mubr.f32.mxu1 %v919_v44  ;;  %1804 = vmatprep.subr.mxu0 %v2234_v27 }
  0xca   : > { %1805 = vmatpush3.msra.mxu0 %v2234_v27 }
  0xcb   : > { %1790 = vmatmul.mubr.f32.gmra.mxu0 %v930_v56  ;;  %1820 = vmatmul.mubr.f32.gmra.mxu1 %v929_v53 }
  0xcc   : > { %1806 = vmatprep.mubr.f32.mxu0 %v899_v45 }
  0xcf   : > { %1807 = vmatmul.mubr.f32.vlgmr.msra.gmra.mxu0 %v909_v54 }
  0xd0   : > { %1809 = vmatprep.mubr.f32.mxu0 %v919_v44 }
  0xd3   : > { %1810 = vmatmul.mubr.f32.gmra.mxu0 %v929_v53 }
 0x109   : > { %v1708_v6 = vpop.f32.mrf.mxu0 }
 0x10b   : > { %v301_v8 = vpop.f32.mrf.mxu0 }
 0x10d   : > { %v1718_v4 = vpop.f32.mrf.mxu1  ;;  %v1711_v10 = vpop.f32.mrf.mxu0 }
 0x10e   : > { %v419_v36 = vadd.f32 %v1718_v4, %v1708_v6 }
 0x10f   : > { %v412_v5 = vpop.f32.mrf.mxu1  ;;  %v321_v12 = vpop.f32.mrf.mxu0 }
 0x110   : > { %v413_v37 = vadd.f32 %v412_v5, %v301_v8 }
 0x111   : > { %v1721_v7 = vpop.f32.mrf.mxu1  ;;  %v1728_v14 = vpop.f32.mrf.mxu0 }
 0x112   : > { %v431_v40 = vadd.f32 %v1721_v7, %v1711_v10  ;;  %v514_v42 = vadd.f32 %v1728_v14, %v419_v36 }
 0x113   : > { %v424_v9 = vpop.f32.mrf.mxu1  ;;  %v506_v16 = vpop.f32.mrf.mxu0 }
 0x114   : > { %v425_v43 = vadd.f32 %v424_v9, %v321_v12  ;;  %v507_v44 = vadd.f32 %v506_v16, %v413_v37 }
 0x115   : > { %v1738_v11 = vpop.f32.mrf.mxu1  ;;  %v1731_v18 = vpop.f32.mrf.mxu0 }
 0x116   : > { %v528_v48 = vadd.f32 %v1731_v18, %v431_v40  ;;  %v611_v50 = vadd.f32 %v1738_v11, %v514_v42 }
 0x117   : > { %v602_v13 = vpop.f32.mrf.mxu1  ;;  %v520_v20 = vpop.f32.mrf.mxu0 }
 0x118   : > { %v603_v53 = vadd.f32 %v602_v13, %v507_v44  ;;  %v521_v54 = vadd.f32 %v520_v20, %v425_v43 }
 0x119   : > { %v1741_v15 = vpop.f32.mrf.mxu1  ;;  %v1748_v22 = vpop.f32.mrf.mxu0 }
 0x11a   : > { %v627_v59 = vadd.f32 %v1741_v15, %v528_v48  ;;  %v710_v62 = vadd.f32 %v1748_v22, %v611_v50 }
 0x11b   : > { %v618_v17 = vpop.f32.mrf.mxu1  ;;  %v703_v24 = vpop.f32.mrf.mxu0 }
 0x11c   : > { %v619_v1 = vadd.f32 %v618_v17, %v521_v54  ;;  %v704_v2 = vadd.f32 %v703_v24, %v603_v53 }
 0x11d   : > { %v1758_v19 = vpop.f32.mrf.mxu1  ;;  %v1751_v27 = vpop.f32.mrf.mxu0 }
 0x11e   : > { %v722_v8 = vadd.f32 %v1751_v27, %v627_v59  ;;  %v801_v10 = vadd.f32 %v1758_v19, %v710_v62 }
 0x11f   : > { %v794_v21 = vpop.f32.mrf.mxu1  ;;  %v715_v30 = vpop.f32.mrf.mxu0 }
 0x120   : > { %v795_v14 = vadd.f32 %v794_v21, %v704_v2  ;;  %v716_v15 = vadd.f32 %v715_v30, %v619_v1 }
 0x121   : > { %v2295_v23 = vpop.f32.mrf.mxu1 }
 0x123   : > { %v2297_v25 = vpop.f32.mrf.mxu1 }
 0x124   : > { %v807_v30 = vadd.f32 %v2297_v25, %v716_v15 }
 0x177   : > { %v1778_v26 = vpop.f32.mrf.mxu1 }
 0x179   : > { %v1016_v28 = vpop.f32.mrf.mxu1 }
 0x17b   : > { %v1781_v29 = vpop.f32.mrf.mxu1 }
 0x17d   : > { %v1028_v31 = vpop.f32.mrf.mxu1 }
 0x17f   : > { %v1768_v32 = vpop.f32.mrf.mxu0  ;;  %v1798_v33 = vpop.f32.mrf.mxu1 }
 0x180   : > { %v1023_v47 = vadd.f32 %v1778_v26, %v1768_v32 }
 0x181   : > { %v905_v34 = vpop.f32.mrf.mxu0  ;;  %v1206_v35 = vpop.f32.mrf.mxu1 }
 0x182   : > { %v1017_v51 = vadd.f32 %v1016_v28, %v905_v34  ;;  %v813_v28 = vadd.f32 %v2295_v23, %v722_v8 }
 0x183   : > { %v1771_v38 = vpop.f32.mrf.mxu0  ;;  %v1801_v39 = vpop.f32.mrf.mxu1 }
 0x184   : > { %v1035_v57 = vadd.f32 %v1781_v29, %v1771_v38 }
 0x185   : > { %v925_v41 = vpop.f32.mrf.mxu0  ;;  %v1222_v45 = vpop.f32.mrf.mxu1 }
 0x186   : > { %v1029_v60 = vadd.f32 %v1028_v31, %v925_v41 }
 0x187   : > { %v1788_v46 = vpop.f32.mrf.mxu0  ;;  %v1818_v55 = vpop.f32.mrf.mxu1 }
 0x188   : > { %v1118_v52 = vadd.f32 %v1788_v46, %v1023_v47 }
 0x189   : > { %v1110_v49 = vpop.f32.mrf.mxu0  ;;  %v1398_v3 = vpop.f32.mrf.mxu1 }
 0x18a   : > { %v1111_v58 = vadd.f32 %v1110_v49, %v1017_v51  ;;  %v1215_v0 = vadd.f32 %v1798_v33, %v1118_v52 }
 0x18b   : > { %v1791_v56 = vpop.f32.mrf.mxu0  ;;  %v1821_v16 = vpop.f32.mrf.mxu1 }
 0x18c   : > { %v1132_v63 = vadd.f32 %v1791_v56, %v1035_v57  ;;  %v1207_v7 = vadd.f32 %v1206_v35, %v1111_v58 }
 0x18d   : > { %v1124_v61 = vpop.f32.mrf.mxu0  ;;  %v1410_v23 = vpop.f32.mrf.mxu1 }
 0x18e   : > { %v1125_v4 = vadd.f32 %v1124_v61, %v1029_v60  ;;  %v1231_v13 = vadd.f32 %v1801_v39, %v1132_v63 }
 0x18f   : > { %v1808_v5 = vpop.f32.mrf.mxu0 }
 0x190   : > { %v1314_v6 = vadd.f32 %v1808_v5, %v1215_v0  ;;  %v1223_v20 = vadd.f32 %v1222_v45, %v1125_v4 }
 0x191   : > { %v1307_v9 = vpop.f32.mrf.mxu0 }
 0x192   : > { %v1405_v11 = vadd.f32 %v1818_v55, %v1314_v6  ;;  %v1308_v12 = vadd.f32 %v1307_v9, %v1207_v7 }
 0x193   : > { %v1811_v18 = vpop.f32.mrf.mxu0 }
 0x194   : > { %v1399_v17 = vadd.f32 %v1398_v3, %v1308_v12  ;;  %v1326_v22 = vadd.f32 %v1811_v18, %v1231_v13  ;;  %v1421_v24 = vadd.f32 %v1405_v11, %v801_v10  ;;  %v1425_v26 = vsub.f32 %v1405_v11, %v801_v10 }
 0x195   : > { %v1319_v29 = vpop.f32.mrf.mxu0 }
 0x196   : > { %v1417_v31 = vadd.f32 %v1821_v16, %v1326_v22  ;;  %v1320_v27 = vadd.f32 %v1319_v29, %v1223_v20  ;;  %1439 = vrot.lane.b32.xlu1 %v1421_v24, %s2046_s19  ;;  %1430 = vst.msk [vmem:[%s2301_s28 + $0x8] sm:$0xff] %vm1428_vm1, %v1421_v24  ;;  %v1420_v19 = vadd.f32 %v1399_v17, %v795_v14  ;;  %1616 = vst.msk [vmem:[%s2301_s28 + $0x48] sm:$0xff] %vm1428_vm1, %v1425_v26 }
 0x197   : > { %v1424_v21 = vsub.f32 %v1399_v17, %v795_v14 }
 0x198   : > { %v1411_v32 = vadd.f32 %v1410_v23, %v1320_v27  ;;  %1437 = vrot.lane.b32.xlu0 %v1420_v19, %s2046_s19  ;;  %1429 = vst.msk [vmem:[%s2301_s28] sm:$0xff] %vm1428_vm1, %v1420_v19  ;;  %v1423_v33 = vadd.f32 %v1417_v31, %v813_v28  ;;  %v1427_v34 = vsub.f32 %v1417_v31, %v813_v28 }
 0x199   : > { %1615 = vst.msk [vmem:[%s2301_s28 + $0x40] sm:$0xff] %vm1428_vm1, %v1424_v21 }
 0x19a   : > { %1465 = vrot.lane.b32.xlu1 %v1425_v26, %s2046_s19  ;;  %1432 = vst.msk [vmem:[%s2301_s28 + $0x18] sm:$0xff] %vm1428_vm1, %v1423_v33  ;;  %v1422_v35 = vadd.f32 %v1411_v32, %v807_v30  ;;  %1618 = vst.msk [vmem:[%s2301_s28 + $0x58] sm:$0xff] %vm1428_vm1, %v1427_v34  ;;  %v1426_v36 = vsub.f32 %v1411_v32, %v807_v30 }
 0x19c   : > { %1463 = vrot.lane.b32.xlu0 %v1424_v21, %s2046_s19  ;;  %1431 = vst.msk [vmem:[%s2301_s28 + $0x10] sm:$0xff] %vm1428_vm1, %v1422_v35  ;;  %1617 = vst.msk [vmem:[%s2301_s28 + $0x50] sm:$0xff] %vm1428_vm1, %v1426_v36 }
 0x19e   : > { %1443 = vrot.lane.b32.xlu1 %v1423_v33, %s2046_s19 }
 0x1a0   : > { %1441 = vrot.lane.b32.xlu0 %v1422_v35, %s2046_s19 }
 0x1a2   : > { %1469 = vrot.lane.b32.xlu1 %v1427_v34, %s2046_s19 }
 0x1a4   : > { %1467 = vrot.lane.b32.xlu0 %v1426_v36, %s2046_s19 }
 0x208   : > { %v1440_v25 = vpop.permute.xlu1 %1439 }
 0x209   : > { %1612 = vst.msk [vmem:[%s2301_s28 + $0x28] sm:$0xff] %vm1428_vm1, %v1440_v25 }
 0x20a   : > { %v1438_v37 = vpop.permute.xlu0 %1437 }
 0x20b   : > { %1611 = vst.msk [vmem:[%s2301_s28 + $0x20] sm:$0xff] %vm1428_vm1, %v1438_v37 }
 0x20c   : > { %v1466_v38 = vpop.permute.xlu1 %1465 }
 0x20d   : > { %1620 = vst.msk [vmem:[%s2301_s28 + $0x68] sm:$0xff] %vm1428_vm1, %v1466_v38 }
 0x20e   : > { %v1464_v39 = vpop.permute.xlu0 %1463 }
 0x20f   : > { %1619 = vst.msk [vmem:[%s2301_s28 + $0x60] sm:$0xff] %vm1428_vm1, %v1464_v39 }
 0x210   : > { %v1444_v40 = vpop.permute.xlu1 %1443 }
 0x211   : > { %1614 = vst.msk [vmem:[%s2301_s28 + $0x38] sm:$0xff] %vm1428_vm1, %v1444_v40 }
 0x212   : > { %v1442_v41 = vpop.permute.xlu0 %1441 }
 0x213   : > { %1613 = vst.msk [vmem:[%s2301_s28 + $0x30] sm:$0xff] %vm1428_vm1, %v1442_v41 }
 0x214   : > { %v1470_v42 = vpop.permute.xlu1 %1469 }
 0x215   : > { %1622 = vst.msk [vmem:[%s2301_s28 + $0x78] sm:$0xff] %vm1428_vm1, %v1470_v42 }
 0x216   : > { %v1468_v43 = vpop.permute.xlu0 %1467 }
 0x217   : > { %1621 = vst.msk [vmem:[%s2301_s28 + $0x70] sm:$0xff] %vm1428_vm1, %v1468_v43 }
 0x218   : > { %1968 = shalt.err (!%p1965_p5)
}
 0x219   : > { %s1969_s4 = scalar_lea.hbm %s2337_s18, 2048  ;;  %s1973_s22 = scalar_lea.hbm %s2393_s2, 4096 }
 0x21a   : > { %p1970_p7 = scmp.ne.s32.totalorder %s2337_s18, %s1969_s4  ;;  %p1974_p9 = scmp.lt.s32.totalorder %s2337_s18, %s2393_s2 }
 0x21b   : > { %p1975_p11 = scmp.lt.s32.totalorder %s1973_s22, %s1969_s4 }
 0x21c   : > { %p1971_p4 = pnand %p1970_p7, %p2155_p13 }
 0x21d   : > { %p1976_p12 = por %p1975_p11, %p1974_p9 }
 0x21e   : > { %p1972_p6 = pneg %p1971_p4 }
 0x220   : > { %p1977_p1 = pnand %p1976_p12, %p1972_p6 }
 0x222   : > { %1980 = shalt.err (!%p1977_p1)
}
 0x223   : > { %s2048_s19 = smov 128   ;;  %s2049_s28 = smov 8  }
 0x224   : > { %1828 = dma.vmem_to_hbm [thread:$0]  (%p2155_p13), %s2339_s24, 2048, %s2337_s18, %s1481_s12, %s2048_s19, %s2048_s19, %s2049_s28  }
 0x225 PF: > { %s1512_s23 = sand.u32 1, %s2019_s9   ;;  %p2407_p8 = scmp.ne.s32.totalorder %s2399_s20, 0 }
 0x226   : > { %p2408_p10 = scmp.ge.s32.totalorder %s2039_s14, 2  ;;  %s1513_s26 = scalar_lea.sflag [#allocation4], %s1512_s23 }
 0x228   : > { %p1839_p0 = pnand %p2408_p10, %p2407_p8 }
 0x22a   : > { %p1840_p2 = pneg %p1839_p0 }
 0x22c   : > { %2014 = dma.done.wait (%p1840_p2), %s1513_s26, 2048  }
 0x22d   : > { %2016 = vsyncadd (%p1840_p2), %s1513_s26, 4294965248  ;;  %s19_s14 = sadd.s32 1, %s2039_s14   ;;  %s2409_s9 = smov %s2023_s10 }
 0x22e   : > { %p16_p3 = scmp.ge.s32.totalorder %s19_s14, 4   ;;  %s2410_s10 = smov %s2027_s11 }
 0x22f   : > { %s2411_s11 = smov %s2164_s15  ;;  %s2412_s12 = smov %s2035_s13 }
 0x230   : > { %s2413_s13 = smov %s2415_s25  ;;  %18 = sbr.rel (!%p16_p3) target bundleno = 7 (0x7), region = 80 }
 0x235   :  { %1518 = vsyncpa [#allocation3], 1 }
 0x236   :  { %1520 = vsyncpa [#allocation3 + $0x1], 1 }
 0x237   :  { %1521 = vsyncpa [#allocation6], 1 }
 0x238   :  { %1522 = vsyncpa [#allocation4], 1 }
 0x239   :  { %1524 = vsyncpa [#allocation4 + $0x1], 1 }

</bundles_post_ra>
